<compile_context>
chip_gen: v7x
topology: tpu7x:2x2x1
jax: 0.10.0
libtpu: 0.0.40
codegen_flags: <defaults>
</compile_context>

<pallas_src>
import math
import functools

import jax
import jax.numpy as jnp
from jax.experimental import pallas as pl
from jax.experimental.pallas import tpu as pltpu


def _cca_kernel(x_ref, y_ref, mask_ref,
                wq_ref, bq_ref, wkv_ref, bkv_ref, wo_ref, bo_ref,
                o_ref, *, nh, hd):
    """One grid step == one batch element."""
    S = x_ref.shape[1]
    C = x_ref.shape[2]

    x = x_ref[0]                     # (S, C)  bf16
    y = y_ref[0]                     # (S, C)  bf16

    # Projections (MXU, bf16 operands, f32 accumulation, f32 bias add).
    q = jnp.dot(x, wq_ref[...], preferred_element_type=jnp.float32) + bq_ref[...]      # (S, C)
    kv = jnp.dot(y, wkv_ref[...], preferred_element_type=jnp.float32) + bkv_ref[...]   # (S, 2C)

    # Additive causal + padding bias, computed ONCE per grid step.
    row = jax.lax.broadcasted_iota(jnp.int32, (S, S), 0)
    col = jax.lax.broadcasted_iota(jnp.int32, (S, S), 1)
    causal = col > row                               # (S, S)
    pad = mask_ref[0] > 0                            # (1, S) -> broadcasts over query rows
    bias = jnp.where(jnp.logical_or(causal, pad),
                     jnp.float32(-1e30), jnp.float32(0.0))   # (S, S) f32

    # Fold 1/sqrt(hd) into Q once; cast MXU operands to bf16.
    scale = 1.0 / math.sqrt(hd)
    q_bf = (q * scale).astype(jnp.bfloat16)          # (S, C)
    kv_bf = kv.astype(jnp.bfloat16)                  # (S, 2C)
    k_all = kv_bf[:, :C]                             # (S, C)  first C cols of Wkv = K
    v_all = kv_bf[:, C:]                             # (S, C)  second C cols of Wkv = V

    ctx_heads = []
    for h in range(nh):                              # nh is small; static unroll is fine
        qh = q_bf[:, h * hd:(h + 1) * hd]            # (S, hd)
        kh = k_all[:, h * hd:(h + 1) * hd]           # (S, hd)
        vh = v_all[:, h * hd:(h + 1) * hd]           # (S, hd)

        # NT matmul: contract over hd directly, no materialized K^T.
        s = jax.lax.dot_general(
            qh, kh, dimension_numbers=(((1,), (1,)), ((), ())),
            preferred_element_type=jnp.float32)      # (S, S) f32
        s = s + bias

        # Numerically-stable softmax over keys (f32 math).  With the finite
        # -1e30 bias the max element of each row yields exp(0)=1, so denom>=1.
        m = jnp.max(s, axis=-1, keepdims=True)
        p = jnp.exp(s - m)                           # unnormalized probs in [0, 1]
        inv = pl.reciprocal(jnp.sum(p, axis=-1, keepdims=True), approx=True)  # (S, 1)

        # Normalize AFTER P@V: scales (S, hd) instead of (S, S).
        ctx_heads.append(
            jnp.dot(p.astype(jnp.bfloat16), vh,
                    preferred_element_type=jnp.float32) * inv)               # (S, hd) f32

    # Single dense (S, C) context -> output projection.
    ctx = jnp.concatenate(ctx_heads, axis=-1).astype(jnp.bfloat16)           # (S, C)
    out = jnp.dot(ctx, wo_ref[...], preferred_element_type=jnp.float32) + bo_ref[...]
    o_ref[0] = out.astype(o_ref.dtype)               # attn_drop / out_drop identity (eval)


def causal_cross_attention(x, y, mask, params, num_heads):
    """x, y: (B, S, C) f32; mask: (B, S) bool (True == masked). Returns f32 (B, S, C)."""
    B, S, C = x.shape
    assert C % num_heads == 0
    hd = C // num_heads

    wq, bq, wkv, bkv, wo, bo = params

    # bf16 MXU operands; biases stay f32 (added after f32 accumulation).
    x_bf = x.astype(jnp.bfloat16)
    y_bf = y.astype(jnp.bfloat16)
    wq_bf = wq.astype(jnp.bfloat16)
    wkv_bf = wkv.astype(jnp.bfloat16)
    wo_bf = wo.astype(jnp.bfloat16)
    bq_f = bq.astype(jnp.float32)
    bkv_f = bkv.astype(jnp.float32)
    bo_f = bo.astype(jnp.float32)

    mask_i32 = mask.astype(jnp.int32).reshape(B, 1, S)

    kernel = functools.partial(_cca_kernel, nh=num_heads, hd=hd)

    full = lambda b: (0, 0)
    grid_spec = pltpu.PrefetchScalarGridSpec(
        num_scalar_prefetch=0,
        grid=(B,),
        in_specs=[
            pl.BlockSpec((1, S, C), lambda b: (b, 0, 0)),   # x
            pl.BlockSpec((1, S, C), lambda b: (b, 0, 0)),   # y
            pl.BlockSpec((1, 1, S), lambda b: (b, 0, 0)),   # mask
            pl.BlockSpec((C, C), full),                     # Wq
            pl.BlockSpec((1, C), full),                     # bq
            pl.BlockSpec((C, 2 * C), full),                 # Wkv
            pl.BlockSpec((1, 2 * C), full),                 # bkv
            pl.BlockSpec((C, C), full),                     # Wo
            pl.BlockSpec((1, C), full),                     # bo
        ],
        out_specs=pl.BlockSpec((1, S, C), lambda b: (b, 0, 0)),
    )

    return pl.pallas_call(
        kernel,
        out_shape=jax.ShapeDtypeStruct((B, S, C), jnp.float32),
        grid_spec=grid_spec,
        compiler_params=pltpu.CompilerParams(
            dimension_semantics=("parallel",),
            vmem_limit_bytes=32 * 1024 * 1024),
    )(x_bf, y_bf, mask_i32, wq_bf, bq_f, wkv_bf, bkv_f, wo_bf, bo_f)


def reference(x, y, mask, params, num_heads):
    """Pure-JAX reference mirroring the PyTorch forward (eval mode)."""
    wq, bq, wkv, bkv, wo, bo = params
    B, S, C = x.shape
    hd = C // num_heads
    q = (x @ wq + bq).reshape(B, S, num_heads, hd).transpose(0, 2, 1, 3)
    kv = y @ wkv + bkv
    k = kv[..., :C].reshape(B, S, num_heads, hd).transpose(0, 2, 1, 3)
    v = kv[..., C:].reshape(B, S, num_heads, hd).transpose(0, 2, 1, 3)
    attn = jnp.einsum('bhqd,bhkd->bhqk', q, k) / math.sqrt(hd)
    causal = jnp.triu(jnp.ones((S, S), dtype=bool), k=1)
    combined = causal[None, None] | mask[:, None, None, :]
    attn = jnp.where(combined, jnp.float32(-1e30), attn)   # finite mask bias
    attn = jax.nn.softmax(attn, axis=-1)
    ctx = jnp.einsum('bhqk,bhkd->bhqd', attn, v).transpose(0, 2, 1, 3).reshape(B, S, C)
    return ctx @ wo + bo


if __name__ == "__main__":
    B, S, C, NH = 2, 8, 32, 4      # batch, seq (== context_size), hidden, heads

    key = jax.random.PRNGKey(0)
    kx, ky, kwq, kbq, kwkv, kbkv, kwo, kbo = jax.random.split(key, 8)

    x = jax.random.normal(kx, (B, S, C), dtype=jnp.float32)
    y = jax.random.normal(ky, (B, S, C), dtype=jnp.float32)

    # Padding mask: True == position is masked out. Keep position 0 unmasked
    # so no softmax row is fully masked.
    mask = jnp.zeros((B, S), dtype=bool).at[1, -2:].set(True)

    scale = 1.0 / math.sqrt(C)
    params = (
        jax.random.uniform(kwq, (C, C), jnp.float32, -scale, scale),       # Wq  (in, out)
        jax.random.uniform(kbq, (1, C), jnp.float32, -scale, scale),       # bq
        jax.random.uniform(kwkv, (C, 2 * C), jnp.float32, -scale, scale),  # Wkv (in, out)
        jax.random.uniform(kbkv, (1, 2 * C), jnp.float32, -scale, scale),  # bkv
        jax.random.uniform(kwo, (C, C), jnp.float32, -scale, scale),       # Wo  (in, out)
        jax.random.uniform(kbo, (1, C), jnp.float32, -scale, scale),       # bo
    )

    out = causal_cross_attention(x, y, mask, params, NH)
    out = jax.block_until_ready(out)

    # Reference computed (in f32, highest precision) from the same
    # bf16-rounded operands the kernel feeds the MXU.
    rnd = lambda a: a.astype(jnp.bfloat16).astype(jnp.float32)
    params_ref = (rnd(params[0]), params[1], rnd(params[2]),
                  params[3], rnd(params[4]), params[5])
    with jax.default_matmul_precision("highest"):
        ref = reference(rnd(x), rnd(y), mask, params_ref, NH)

    assert out.shape == (B, S, C)
    assert jnp.allclose(out, ref, atol=2e-2, rtol=2e-2), "mismatch vs reference"

    print("KERNEL_OK")
</pallas_src>

<mosaic_0001>
module attributes {stable_mosaic.version = 11 : i64} {
  func.func @_cca_kernel(%arg0: i32, %arg1: memref<1x8x32xbf16, #tpu.memory_space<vmem>>, %arg2: memref<1x8x32xbf16, #tpu.memory_space<vmem>>, %arg3: memref<1x1x8xi32, #tpu.memory_space<vmem>>, %arg4: memref<32x32xbf16, #tpu.memory_space<vmem>>, %arg5: memref<1x32xf32, #tpu.memory_space<vmem>>, %arg6: memref<32x64xbf16, #tpu.memory_space<vmem>>, %arg7: memref<1x64xf32, #tpu.memory_space<vmem>>, %arg8: memref<32x32xbf16, #tpu.memory_space<vmem>>, %arg9: memref<1x32xf32, #tpu.memory_space<vmem>>, %arg10: memref<1x8x32xf32, #tpu.memory_space<vmem>>) attributes {dimension_semantics = [#tpu.dimension_semantics<parallel>], iteration_bounds = array<i64: 2>, scalar_prefetch = 0 : i64, scratch_operands = 0 : i64, tpu.core_type = #tpu.core_type<tc>, window_params = [{transform_indices = @transform_0, window_bounds = array<i64: 1, 8, 32>}, {transform_indices = @transform_1, window_bounds = array<i64: 1, 8, 32>}, {transform_indices = @transform_2, window_bounds = array<i64: 1, 1, 8>}, {pipeline_mode = #tpu.pipeline_mode<synchronous>, transform_indices = @transform_3, window_bounds = array<i64: 32, 32>}, {pipeline_mode = #tpu.pipeline_mode<synchronous>, transform_indices = @transform_4, window_bounds = array<i64: 1, 32>}, {pipeline_mode = #tpu.pipeline_mode<synchronous>, transform_indices = @transform_5, window_bounds = array<i64: 32, 64>}, {pipeline_mode = #tpu.pipeline_mode<synchronous>, transform_indices = @transform_6, window_bounds = array<i64: 1, 64>}, {pipeline_mode = #tpu.pipeline_mode<synchronous>, transform_indices = @transform_7, window_bounds = array<i64: 32, 32>}, {pipeline_mode = #tpu.pipeline_mode<synchronous>, transform_indices = @transform_8, window_bounds = array<i64: 1, 32>}, {transform_indices = @transform_9, window_bounds = array<i64: 1, 8, 32>}]} {
    %c0 = arith.constant 0 : index
    %c0_0 = arith.constant 0 : index
    %c0_1 = arith.constant 0 : index
    %0 = vector.load %arg1[%c0, %c0_0, %c0_1] : memref<1x8x32xbf16, #tpu.memory_space<vmem>>, vector<1x8x32xbf16>
    %1 = vector.shape_cast %0 : vector<1x8x32xbf16> to vector<8x32xbf16>
    %c0_2 = arith.constant 0 : index
    %c0_3 = arith.constant 0 : index
    %c0_4 = arith.constant 0 : index
    %2 = vector.load %arg2[%c0_2, %c0_3, %c0_4] : memref<1x8x32xbf16, #tpu.memory_space<vmem>>, vector<1x8x32xbf16>
    %3 = vector.shape_cast %2 : vector<1x8x32xbf16> to vector<8x32xbf16>
    %c0_5 = arith.constant 0 : index
    %c0_6 = arith.constant 0 : index
    %4 = vector.load %arg4[%c0_5, %c0_6] : memref<32x32xbf16, #tpu.memory_space<vmem>>, vector<32x32xbf16>
    %cst = arith.constant dense<0.000000e+00> : vector<8x32xf32>
    %5 = tpu.matmul %1, %4, %cst {dimension_numbers = #tpu.dot_dimension_numbers<[1], [0], [0], [1], [0, 0, 1, 1], [], []>} : vector<8x32xbf16>, vector<32x32xbf16>, vector<8x32xf32> -> vector<8x32xf32>
    %c0_7 = arith.constant 0 : index
    %c0_8 = arith.constant 0 : index
    %6 = vector.load %arg5[%c0_7, %c0_8] : memref<1x32xf32, #tpu.memory_space<vmem>>, vector<1x32xf32>
    %7 = vector.broadcast %6 : vector<1x32xf32> to vector<8x32xf32>
    %8 = arith.addf %5, %7 : vector<8x32xf32>
    %c0_9 = arith.constant 0 : index
    %c0_10 = arith.constant 0 : index
    %9 = vector.load %arg6[%c0_9, %c0_10] : memref<32x64xbf16, #tpu.memory_space<vmem>>, vector<32x64xbf16>
    %cst_11 = arith.constant dense<0.000000e+00> : vector<8x64xf32>
    %10 = tpu.matmul %3, %9, %cst_11 {dimension_numbers = #tpu.dot_dimension_numbers<[1], [0], [0], [1], [0, 0, 1, 1], [], []>} : vector<8x32xbf16>, vector<32x64xbf16>, vector<8x64xf32> -> vector<8x64xf32>
    %c0_12 = arith.constant 0 : index
    %c0_13 = arith.constant 0 : index
    %11 = vector.load %arg7[%c0_12, %c0_13] : memref<1x64xf32, #tpu.memory_space<vmem>>, vector<1x64xf32>
    %12 = vector.broadcast %11 : vector<1x64xf32> to vector<8x64xf32>
    %13 = arith.addf %10, %12 : vector<8x64xf32>
    %14 = tpu.iota {dimensions = array<i32: 0>} : vector<8x8xi32>
    %15 = tpu.iota {dimensions = array<i32: 1>} : vector<8x8xi32>
    %16 = arith.cmpi sgt, %15, %14 : vector<8x8xi32>
    %c0_14 = arith.constant 0 : index
    %c0_15 = arith.constant 0 : index
    %c0_16 = arith.constant 0 : index
    %17 = vector.load %arg3[%c0_14, %c0_15, %c0_16] : memref<1x1x8xi32, #tpu.memory_space<vmem>>, vector<1x1x8xi32>
    %18 = vector.shape_cast %17 : vector<1x1x8xi32> to vector<1x8xi32>
    %c0_i32 = arith.constant 0 : i32
    %19 = vector.broadcast %c0_i32 : i32 to vector<1x8xi32>
    %20 = arith.cmpi sgt, %18, %19 : vector<1x8xi32>
    %21 = vector.broadcast %20 : vector<1x8xi1> to vector<8x8xi1>
    %22 = arith.ori %16, %21 : vector<8x8xi1>
    %cst_17 = arith.constant -1.000000e+30 : f32
    %cst_18 = arith.constant 0.000000e+00 : f32
    %23 = vector.broadcast %cst_17 : f32 to vector<8x8xf32>
    %24 = vector.broadcast %cst_18 : f32 to vector<8x8xf32>
    %25 = arith.select %22, %23, %24 : vector<8x8xi1>, vector<8x8xf32>
    %cst_19 = arith.constant 0.353553385 : f32
    %26 = vector.broadcast %cst_19 : f32 to vector<8x32xf32>
    %27 = arith.mulf %8, %26 : vector<8x32xf32>
    %28 = arith.truncf %27 : vector<8x32xf32> to vector<8x32xbf16>
    %29 = arith.truncf %13 : vector<8x64xf32> to vector<8x64xbf16>
    %30 = vector.extract_strided_slice %29 {offsets = [0, 0], sizes = [8, 32], strides = [1, 1]} : vector<8x64xbf16> to vector<8x32xbf16>
    %31 = vector.extract_strided_slice %29 {offsets = [0, 32], sizes = [8, 32], strides = [1, 1]} : vector<8x64xbf16> to vector<8x32xbf16>
    %32 = vector.extract_strided_slice %28 {offsets = [0, 0], sizes = [8, 8], strides = [1, 1]} : vector<8x32xbf16> to vector<8x8xbf16>
    %33 = vector.extract_strided_slice %30 {offsets = [0, 0], sizes = [8, 8], strides = [1, 1]} : vector<8x32xbf16> to vector<8x8xbf16>
    %34 = vector.extract_strided_slice %31 {offsets = [0, 0], sizes = [8, 8], strides = [1, 1]} : vector<8x32xbf16> to vector<8x8xbf16>
    %cst_20 = arith.constant dense<0.000000e+00> : vector<8x8xf32>
    %35 = tpu.matmul %32, %33, %cst_20 {dimension_numbers = #tpu.dot_dimension_numbers<[1], [1], [0], [0], [0, 0, 1, 0], [], []>} : vector<8x8xbf16>, vector<8x8xbf16>, vector<8x8xf32> -> vector<8x8xf32>
    %36 = arith.addf %35, %25 : vector<8x8xf32>
    %cst_21 = arith.constant dense<0xFF800000> : vector<8xf32>
    %37 = vector.multi_reduction <maximumf>, %36, %cst_21 [1] : vector<8x8xf32> to vector<8xf32>
    %38 = vector.shape_cast %37 : vector<8xf32> to vector<8x1xf32>
    %39 = vector.broadcast %38 : vector<8x1xf32> to vector<8x8xf32>
    %40 = arith.subf %36, %39 : vector<8x8xf32>
    %41 = math.exp %40 : vector<8x8xf32>
    %cst_22 = arith.constant dense<0.000000e+00> : vector<8xf32>
    %42 = vector.multi_reduction <add>, %41, %cst_22 [1] : vector<8x8xf32> to vector<8xf32>
    %43 = vector.shape_cast %42 : vector<8xf32> to vector<8x1xf32>
    %44 = tpu.reciprocal %43 {approx = true} : vector<8x1xf32> -> vector<8x1xf32>
    %45 = arith.truncf %41 : vector<8x8xf32> to vector<8x8xbf16>
    %cst_23 = arith.constant dense<0.000000e+00> : vector<8x8xf32>
    %46 = tpu.matmul %45, %34, %cst_23 {dimension_numbers = #tpu.dot_dimension_numbers<[1], [0], [0], [1], [0, 0, 1, 1], [], []>} : vector<8x8xbf16>, vector<8x8xbf16>, vector<8x8xf32> -> vector<8x8xf32>
    %47 = vector.broadcast %44 : vector<8x1xf32> to vector<8x8xf32>
    %48 = arith.mulf %46, %47 : vector<8x8xf32>
    %49 = vector.extract_strided_slice %28 {offsets = [0, 8], sizes = [8, 8], strides = [1, 1]} : vector<8x32xbf16> to vector<8x8xbf16>
    %50 = vector.extract_strided_slice %30 {offsets = [0, 8], sizes = [8, 8], strides = [1, 1]} : vector<8x32xbf16> to vector<8x8xbf16>
    %51 = vector.extract_strided_slice %31 {offsets = [0, 8], sizes = [8, 8], strides = [1, 1]} : vector<8x32xbf16> to vector<8x8xbf16>
    %cst_24 = arith.constant dense<0.000000e+00> : vector<8x8xf32>
    %52 = tpu.matmul %49, %50, %cst_24 {dimension_numbers = #tpu.dot_dimension_numbers<[1], [1], [0], [0], [0, 0, 1, 0], [], []>} : vector<8x8xbf16>, vector<8x8xbf16>, vector<8x8xf32> -> vector<8x8xf32>
    %53 = arith.addf %52, %25 : vector<8x8xf32>
    %cst_25 = arith.constant dense<0xFF800000> : vector<8xf32>
    %54 = vector.multi_reduction <maximumf>, %53, %cst_25 [1] : vector<8x8xf32> to vector<8xf32>
    %55 = vector.shape_cast %54 : vector<8xf32> to vector<8x1xf32>
    %56 = vector.broadcast %55 : vector<8x1xf32> to vector<8x8xf32>
    %57 = arith.subf %53, %56 : vector<8x8xf32>
    %58 = math.exp %57 : vector<8x8xf32>
    %cst_26 = arith.constant dense<0.000000e+00> : vector<8xf32>
    %59 = vector.multi_reduction <add>, %58, %cst_26 [1] : vector<8x8xf32> to vector<8xf32>
    %60 = vector.shape_cast %59 : vector<8xf32> to vector<8x1xf32>
    %61 = tpu.reciprocal %60 {approx = true} : vector<8x1xf32> -> vector<8x1xf32>
    %62 = arith.truncf %58 : vector<8x8xf32> to vector<8x8xbf16>
    %cst_27 = arith.constant dense<0.000000e+00> : vector<8x8xf32>
    %63 = tpu.matmul %62, %51, %cst_27 {dimension_numbers = #tpu.dot_dimension_numbers<[1], [0], [0], [1], [0, 0, 1, 1], [], []>} : vector<8x8xbf16>, vector<8x8xbf16>, vector<8x8xf32> -> vector<8x8xf32>
    %64 = vector.broadcast %61 : vector<8x1xf32> to vector<8x8xf32>
    %65 = arith.mulf %63, %64 : vector<8x8xf32>
    %66 = vector.extract_strided_slice %28 {offsets = [0, 16], sizes = [8, 8], strides = [1, 1]} : vector<8x32xbf16> to vector<8x8xbf16>
    %67 = vector.extract_strided_slice %30 {offsets = [0, 16], sizes = [8, 8], strides = [1, 1]} : vector<8x32xbf16> to vector<8x8xbf16>
    %68 = vector.extract_strided_slice %31 {offsets = [0, 16], sizes = [8, 8], strides = [1, 1]} : vector<8x32xbf16> to vector<8x8xbf16>
    %cst_28 = arith.constant dense<0.000000e+00> : vector<8x8xf32>
    %69 = tpu.matmul %66, %67, %cst_28 {dimension_numbers = #tpu.dot_dimension_numbers<[1], [1], [0], [0], [0, 0, 1, 0], [], []>} : vector<8x8xbf16>, vector<8x8xbf16>, vector<8x8xf32> -> vector<8x8xf32>
    %70 = arith.addf %69, %25 : vector<8x8xf32>
    %cst_29 = arith.constant dense<0xFF800000> : vector<8xf32>
    %71 = vector.multi_reduction <maximumf>, %70, %cst_29 [1] : vector<8x8xf32> to vector<8xf32>
    %72 = vector.shape_cast %71 : vector<8xf32> to vector<8x1xf32>
    %73 = vector.broadcast %72 : vector<8x1xf32> to vector<8x8xf32>
    %74 = arith.subf %70, %73 : vector<8x8xf32>
    %75 = math.exp %74 : vector<8x8xf32>
    %cst_30 = arith.constant dense<0.000000e+00> : vector<8xf32>
    %76 = vector.multi_reduction <add>, %75, %cst_30 [1] : vector<8x8xf32> to vector<8xf32>
    %77 = vector.shape_cast %76 : vector<8xf32> to vector<8x1xf32>
    %78 = tpu.reciprocal %77 {approx = true} : vector<8x1xf32> -> vector<8x1xf32>
    %79 = arith.truncf %75 : vector<8x8xf32> to vector<8x8xbf16>
    %cst_31 = arith.constant dense<0.000000e+00> : vector<8x8xf32>
    %80 = tpu.matmul %79, %68, %cst_31 {dimension_numbers = #tpu.dot_dimension_numbers<[1], [0], [0], [1], [0, 0, 1, 1], [], []>} : vector<8x8xbf16>, vector<8x8xbf16>, vector<8x8xf32> -> vector<8x8xf32>
    %81 = vector.broadcast %78 : vector<8x1xf32> to vector<8x8xf32>
    %82 = arith.mulf %80, %81 : vector<8x8xf32>
    %83 = vector.extract_strided_slice %28 {offsets = [0, 24], sizes = [8, 8], strides = [1, 1]} : vector<8x32xbf16> to vector<8x8xbf16>
    %84 = vector.extract_strided_slice %30 {offsets = [0, 24], sizes = [8, 8], strides = [1, 1]} : vector<8x32xbf16> to vector<8x8xbf16>
    %85 = vector.extract_strided_slice %31 {offsets = [0, 24], sizes = [8, 8], strides = [1, 1]} : vector<8x32xbf16> to vector<8x8xbf16>
    %cst_32 = arith.constant dense<0.000000e+00> : vector<8x8xf32>
    %86 = tpu.matmul %83, %84, %cst_32 {dimension_numbers = #tpu.dot_dimension_numbers<[1], [1], [0], [0], [0, 0, 1, 0], [], []>} : vector<8x8xbf16>, vector<8x8xbf16>, vector<8x8xf32> -> vector<8x8xf32>
    %87 = arith.addf %86, %25 : vector<8x8xf32>
    %cst_33 = arith.constant dense<0xFF800000> : vector<8xf32>
    %88 = vector.multi_reduction <maximumf>, %87, %cst_33 [1] : vector<8x8xf32> to vector<8xf32>
    %89 = vector.shape_cast %88 : vector<8xf32> to vector<8x1xf32>
    %90 = vector.broadcast %89 : vector<8x1xf32> to vector<8x8xf32>
    %91 = arith.subf %87, %90 : vector<8x8xf32>
    %92 = math.exp %91 : vector<8x8xf32>
    %cst_34 = arith.constant dense<0.000000e+00> : vector<8xf32>
    %93 = vector.multi_reduction <add>, %92, %cst_34 [1] : vector<8x8xf32> to vector<8xf32>
    %94 = vector.shape_cast %93 : vector<8xf32> to vector<8x1xf32>
    %95 = tpu.reciprocal %94 {approx = true} : vector<8x1xf32> -> vector<8x1xf32>
    %96 = arith.truncf %92 : vector<8x8xf32> to vector<8x8xbf16>
    %cst_35 = arith.constant dense<0.000000e+00> : vector<8x8xf32>
    %97 = tpu.matmul %96, %85, %cst_35 {dimension_numbers = #tpu.dot_dimension_numbers<[1], [0], [0], [1], [0, 0, 1, 1], [], []>} : vector<8x8xbf16>, vector<8x8xbf16>, vector<8x8xf32> -> vector<8x8xf32>
    %98 = vector.broadcast %95 : vector<8x1xf32> to vector<8x8xf32>
    %99 = arith.mulf %97, %98 : vector<8x8xf32>
    %100 = tpu.concatenate %48, %65, %82, %99 in 1 : vector<8x8xf32>, vector<8x8xf32>, vector<8x8xf32>, vector<8x8xf32> -> vector<8x32xf32>
    %101 = arith.truncf %100 : vector<8x32xf32> to vector<8x32xbf16>
    %c0_36 = arith.constant 0 : index
    %c0_37 = arith.constant 0 : index
    %102 = vector.load %arg8[%c0_36, %c0_37] : memref<32x32xbf16, #tpu.memory_space<vmem>>, vector<32x32xbf16>
    %cst_38 = arith.constant dense<0.000000e+00> : vector<8x32xf32>
    %103 = tpu.matmul %101, %102, %cst_38 {dimension_numbers = #tpu.dot_dimension_numbers<[1], [0], [0], [1], [0, 0, 1, 1], [], []>} : vector<8x32xbf16>, vector<32x32xbf16>, vector<8x32xf32> -> vector<8x32xf32>
    %c0_39 = arith.constant 0 : index
    %c0_40 = arith.constant 0 : index
    %104 = vector.load %arg9[%c0_39, %c0_40] : memref<1x32xf32, #tpu.memory_space<vmem>>, vector<1x32xf32>
    %105 = vector.broadcast %104 : vector<1x32xf32> to vector<8x32xf32>
    %106 = arith.addf %103, %105 : vector<8x32xf32>
    %c0_41 = arith.constant 0 : index
    %c0_42 = arith.constant 0 : index
    %c0_43 = arith.constant 0 : index
    %107 = vector.load %arg10[%c0_41, %c0_42, %c0_43] : memref<1x8x32xf32, #tpu.memory_space<vmem>>, vector<1x8x32xf32>
    %108 = vector.shape_cast %107 : vector<1x8x32xf32> to vector<8x32xf32>
    %109 = vector.shape_cast %106 : vector<8x32xf32> to vector<1x8x32xf32>
    tpu.vector_store %arg10[%c0_41, %c0_42, %c0_43], %109 {strides = array<i32>} : memref<1x8x32xf32, #tpu.memory_space<vmem>>, vector<1x8x32xf32>,
    return
  }
  func.func @transform_0(%arg0: i32) -> (i32, i32, i32) {
    %c0_i32 = arith.constant 0 : i32
    %c0_i32_0 = arith.constant 0 : i32
    %c0_i32_1 = arith.constant 0 : i32
    return %arg0, %c0_i32, %c0_i32_0 : i32, i32, i32
  }
  func.func @transform_1(%arg0: i32) -> (i32, i32, i32) {
    %c0_i32 = arith.constant 0 : i32
    %c0_i32_0 = arith.constant 0 : i32
    %c0_i32_1 = arith.constant 0 : i32
    return %arg0, %c0_i32, %c0_i32_0 : i32, i32, i32
  }
  func.func @transform_2(%arg0: i32) -> (i32, i32, i32) {
    %c0_i32 = arith.constant 0 : i32
    %c0_i32_0 = arith.constant 0 : i32
    %c0_i32_1 = arith.constant 0 : i32
    return %arg0, %c0_i32, %c0_i32_0 : i32, i32, i32
  }
  func.func @transform_3(%arg0: i32) -> (i32, i32) {
    %c0_i32 = arith.constant 0 : i32
    %c0_i32_0 = arith.constant 0 : i32
    %c0_i32_1 = arith.constant 0 : i32
    return %c0_i32, %c0_i32_0 : i32, i32
  }
  func.func @transform_4(%arg0: i32) -> (i32, i32) {
    %c0_i32 = arith.constant 0 : i32
    %c0_i32_0 = arith.constant 0 : i32
    %c0_i32_1 = arith.constant 0 : i32
    return %c0_i32, %c0_i32_0 : i32, i32
  }
  func.func @transform_5(%arg0: i32) -> (i32, i32) {
    %c0_i32 = arith.constant 0 : i32
    %c0_i32_0 = arith.constant 0 : i32
    %c0_i32_1 = arith.constant 0 : i32
    return %c0_i32, %c0_i32_0 : i32, i32
  }
  func.func @transform_6(%arg0: i32) -> (i32, i32) {
    %c0_i32 = arith.constant 0 : i32
    %c0_i32_0 = arith.constant 0 : i32
    %c0_i32_1 = arith.constant 0 : i32
    return %c0_i32, %c0_i32_0 : i32, i32
  }
  func.func @transform_7(%arg0: i32) -> (i32, i32) {
    %c0_i32 = arith.constant 0 : i32
    %c0_i32_0 = arith.constant 0 : i32
    %c0_i32_1 = arith.constant 0 : i32
    return %c0_i32, %c0_i32_0 : i32, i32
  }
  func.func @transform_8(%arg0: i32) -> (i32, i32) {
    %c0_i32 = arith.constant 0 : i32
    %c0_i32_0 = arith.constant 0 : i32
    %c0_i32_1 = arith.constant 0 : i32
    return %c0_i32, %c0_i32_0 : i32, i32
  }
  func.func @transform_9(%arg0: i32) -> (i32, i32, i32) {
    %c0_i32 = arith.constant 0 : i32
    %c0_i32_0 = arith.constant 0 : i32
    %c0_i32_1 = arith.constant 0 : i32
    return %arg0, %c0_i32, %c0_i32_0 : i32, i32, i32
  }
}

</mosaic_0001>

<bundles_post_ra>
// kernel: tpu_custom_call.1
= control target key start
LH: loop header
LB: loop body
LE: loop exit
PB: predicated region body
PF: predicated region fallthrough
CT: control target
= control target key end

     0   :  { %s2204_s0 = inlined_call_operand.hbm [shape: bf16[2,8,32], index: 0, kind: input, shape index: {}]   ;;  %s2205_s1 = inlined_call_operand.hbm [shape: bf16[2,8,32], index: 1, kind: input, shape index: {}]   ;;  %s2206_s2 = inlined_call_operand.vmem [shape: s32[2,1,8], index: 2, kind: input, shape index: {}]   ;;  %s2207_s3 = inlined_call_operand.hbm [shape: bf16[32,32], index: 3, kind: input, shape index: {}]   ;;  %s2208_s4 = inlined_call_operand.hbm [shape: f32[1,32], index: 4, kind: input, shape index: {}]   ;;  %s2209_s5 = inlined_call_operand.vmem [shape: bf16[32,64], index: 5, kind: input, shape index: {}]   ;;  %s2210_s6 = inlined_call_operand.vmem [shape: f32[1,64], index: 6, kind: input, shape index: {}]   ;;  %s2211_s7 = inlined_call_operand.hbm [shape: bf16[32,32], index: 7, kind: input, shape index: {}]   ;;  %s2212_s8 = inlined_call_operand.vmem [shape: f32[1,32], index: 8, kind: input, shape index: {}]   ;;  %s2213_s9 = inlined_call_operand.hbm [shape: f32[2,8,32], index: 9, kind: output, shape index: {}]  }
   0x1   :  { %2221 = sst [smem:[#allocation19_spill]] %s2207_s3 }
   0x2   :  { %2222 = sst [smem:[#allocation20_spill]] %s2208_s4 }
   0x3   :  { %2223 = sst [smem:[#allocation21_spill]] %s2211_s7 }
   0x4   :  { %2224 = sst [smem:[#allocation22_spill]] %s2213_s9 }
   0x5   :  { %14 = vsyncpa [#allocation3], 0 }
   0x6   :  { %16 = vsyncpa [#allocation3 + $0x1], 0 }
   0x7   :  { %17 = vsyncpa [#allocation6], 0 }
   0x8   :  { %19 = vsyncpa [#allocation6 + $0x1], 0 }
   0x9   :  { %20 = vsyncpa [#allocation9], 0 }
   0xa   :  { %21 = vsyncpa [#allocation4], 0 }
   0xb   :  { %23 = vsyncpa [#allocation4 + $0x1], 0  ;;  %s1815_s30 = smov 0   ;;  %s1817_s10 = smov 0  }
   0xc   :  { %s1819_s11 = smov 0   ;;  %s1821_s12 = smov 0  }
   0xd LB: > { %2225 = sst [smem:[#allocation17_spill]] %s1730_s30  ;;  %s1836_s13 = sadd.s32 4294967295, %s1742_s12   ;;  %s1742_s12 = sphi %s1821_s12, %s2253_s12   ;;  %s1738_s11 = sphi %s1819_s11, %s2252_s11   ;;  %s1734_s10 = sphi %s1817_s10, %s2251_s10   ;;  %s1730_s30 = sphi %s1815_s30, %s2250_s30  }
   0xe   : > { %s1263_s14 = sadd.s32 4294967294, %s1742_s12   ;;  %p49_p0 = scmp.ne.s32.totalorder %s1734_s10, %s1730_s30 }
   0xf   : > { %p2214_p1 = scmp.eq.s32.totalorder %s1836_s13, 0  ;;  %p257_p3 = scmp.eq.s32.totalorder %s1263_s14, 1 }
  0x10   : > { %p1264_p5 = scmp.ge.s32.totalorder %s1742_s12, 1  ;;  %p264_p7 = scmp.lt.s32.totalorder %s1742_s12, 3 }
  0x11   : > { %p1845_p4 = por %p2214_p1, %p49_p0  ;;  %p1850_p6 = por %p257_p3, %p49_p0 }
  0x12   : > { %p1855_p8 = pnand %p1264_p5, %p264_p7  ;;  %s1744_s18 = smov [#allocation7]  }
  0x13   : > { %s2226_s15 = scalar_select %p1845_p4, 1, 0 }
  0x14   : > { %s2227_s16 = scalar_select %p1850_p6, 1, 0 }
  0x15   : > { %s2229_s17 = scalar_select %p1855_p8, 1, 0 }
  0x16   : > { %2228 = sst [smem:[#allocation18_spill]] %s2227_s16  ;;  %s276_s19 = sshll.u32 %s1744_s18, 4  ;;  %s1859_s19 = int_to_ptr.vmem [resolvable:$true] %s276_s19 }
  0x17   : > { %p1419_p9 = pneg %p1855_p8  ;;  %s1745_s21 = smov [#allocation8]  }
  0x18   : > { %s290_s22 = sshll.u32 %s1745_s21, 4  ;;  %s1746_s23 = smov [#allocation10]   ;;  %s1870_s22 = int_to_ptr.vmem [resolvable:$true] %s290_s22 }
  0x19   : > { %p1866_p11 = pnand %p1419_p9, %p2214_p1  ;;  %s1872_s24 = sshll.u32 %s1746_s23, 4  ;;  %s307_s24 = int_to_ptr.vmem [resolvable:$true] %s1872_s24 }
  0x1a   : > { %s2231_s3 = sld [smem:[#allocation19_spill]] }
  0x1b   : > { %p1882_p13 = pneg %p1866_p11 }
  0x20   : > { %s1520_s27 = scalar_lea.hbm %s2231_s3, 256 }
  0x21   : > { %p1521_p12 = scmp.ne.s32.totalorder %s2231_s3, %s1520_s27  ;;  %p1527_p5 = scmp.lt.u32.totalorder %s1520_s27, %s2231_s3 }
  0x23   : > { %p1523_p0 = pnand %p1882_p13, %p1521_p12 }
  0x25   : > { %p1524_p3 = pneg %p1523_p0 }
  0x27   : > { %p1529_p7 = pnand %p1527_p5, %p1524_p3 }
  0x29   : > { %1532 = shalt.err (!%p1529_p7)
}
  0x2a   : > { %s1533_s23 = scalar_lea.vmem %s1859_s19, 256  ;;  %p1541_p2 = scmp.lt.s32.totalorder %s1859_s19, %s1859_s19 }
  0x2b   : > { %p1534_p9 = scmp.ne.s32.totalorder %s1859_s19, %s1533_s23  ;;  %p1542_p6 = scmp.lt.s32.totalorder %s1533_s23, %s1533_s23 }
  0x2d   : > { %p1536_p10 = pnand %p1534_p9, %p1882_p13  ;;  %p1543_p12 = por %p1542_p6, %p1541_p2 }
  0x2f   : > { %p1537_p1 = pneg %p1536_p10 }
  0x31   : > { %p1544_p0 = pnand %p1543_p12, %p1537_p1 }
  0x33   : > { %1547 = shalt.err (!%p1544_p0)
}
  0x34   : > { %s1747_s25 = smov 64   ;;  %s1748_s26 = smov 4  }
  0x35   : > { %1422 = dma.hbm_to_vmem [thread:$0]  (!%p1866_p11), %s2231_s3, 256, %s1859_s19, [#allocation6], %s1747_s25, %s1747_s25, %s1748_s26  }
  0x36   : > { %s2233_s4 = sld [smem:[#allocation20_spill]] }
  0x3c   : > { %s1548_s21 = scalar_lea.hbm %s2233_s4, 16 }
  0x3d   : > { %p1549_p1 = scmp.ne.s32.totalorder %s2233_s4, %s1548_s21  ;;  %p1555_p10 = scmp.lt.u32.totalorder %s1548_s21, %s2233_s4 }
  0x3f   : > { %p1551_p2 = pnand %p1549_p1, %p1882_p13 }
  0x41   : > { %p1552_p6 = pneg %p1551_p2 }
  0x43   : > { %p1557_p3 = pnand %p1555_p10, %p1552_p6 }
  0x45   : > { %1560 = shalt.err (!%p1557_p3)
}
  0x46   : > { %s1561_s19 = scalar_lea.vmem %s1870_s22, 16  ;;  %s1568_s16 = scalar_lea.vmem %s1870_s22, 32 }
  0x47   : > { %p1562_p5 = scmp.ne.s32.totalorder %s1870_s22, %s1561_s19  ;;  %p1569_p12 = scmp.lt.s32.totalorder %s1870_s22, %s1870_s22 }
  0x48   : > { %p1570_p0 = scmp.lt.s32.totalorder %s1568_s16, %s1561_s19 }
  0x49   : > { %p1564_p7 = pnand %p1562_p5, %p1882_p13 }
  0x4a   : > { %p1571_p1 = por %p1570_p0, %p1569_p12 }
  0x4b   : > { %p1565_p9 = pneg %p1564_p7 }
  0x4d   : > { %p1572_p2 = pnand %p1571_p1, %p1565_p9 }
  0x4f   : > { %1575 = shalt.err (!%p1572_p2)
}
  0x50   : > { %1425 = dma.hbm_to_vmem [thread:$0]  (!%p1866_p11), %s2233_s4, 16, %s1870_s22, [#allocation9]  }
  0x51   : > { %s2234_s7 = sld [smem:[#allocation21_spill]] }
  0x57   : > { %s1576_s29 = scalar_lea.hbm %s2234_s7, 256 }
  0x58   : > { %p1577_p6 = scmp.ne.s32.totalorder %s2234_s7, %s1576_s29  ;;  %p1583_p5 = scmp.lt.u32.totalorder %s1576_s29, %s2234_s7 }
  0x5a   : > { %p1579_p10 = pnand %p1577_p6, %p1882_p13 }
  0x5c   : > { %p1580_p3 = pneg %p1579_p10 }
  0x5e   : > { %p1585_p7 = pnand %p1583_p5, %p1580_p3 }
  0x60   : > { %1588 = shalt.err (!%p1585_p7)
}
  0x61   : > { %s1589_s16 = scalar_lea.vmem %s307_s24, 256  ;;  %p1597_p1 = scmp.lt.s32.totalorder %s307_s24, %s307_s24 }
  0x62   : > { %p1590_p9 = scmp.ne.s32.totalorder %s307_s24, %s1589_s16  ;;  %p1598_p2 = scmp.lt.s32.totalorder %s1589_s16, %s1589_s16 }
  0x64   : > { %p1592_p12 = pnand %p1590_p9, %p1882_p13  ;;  %p1599_p4 = por %p1598_p2, %p1597_p1 }
  0x66   : > { %p1593_p0 = pneg %p1592_p12 }
  0x68   : > { %p1600_p8 = pnand %p1599_p4, %p1593_p0 }
  0x6a   : > { %1603 = shalt.err (!%p1600_p8)
}
  0x6b   : > { %1428 = dma.hbm_to_vmem [thread:$0]  (!%p1866_p11), %s2234_s7, 256, %s307_s24, [#allocation9], %s1747_s25, %s1747_s25, %s1748_s26  }
  0x6c   : > { %s1953_s14 = sadd.s32 1, %s1742_s12   ;;  %s36_s30 = sadd.s32 1, %s1738_s11 }
  0x6d   : > { %s33_s20 = ssub.s32 %s1742_s12, %s1953_s14  ;;  %p43_p8 = scmp.ne.s32.totalorder %s1738_s11, %s1734_s10 }
  0x6e   : > { %p34_p4 = scmp.eq.s32.totalorder %s33_s20, 0  ;;  %p44_p13 = scmp.eq.s32.totalorder %s1742_s12, 0 }
  0x6f   : > { %p1443_p6 = scmp.lt.s32.totalorder %s1742_s12, 2  ;;  %p2235_p3 = scmp.eq.s32.totalorder %s1836_s13, 1 }
  0x70   : > { %s1963_s27 = scalar_select %p34_p4, %s1738_s11, %s36_s30  }
  0x71   : > { %p45_p10 = por %p44_p13, %p43_p8  ;;  %p1967_p5 = por %p2235_p3, %p43_p8 }
  0x72   : > { %s323_s29 = sand.u32 1, %s1738_s11   ;;  %s1270_s18 = sshll.u32 %s1742_s12, 6 }
  0x73   : > { %s2236_s28 = scalar_select %p1967_p5, 1, 0 }
  0x74   : > { %s1973_s24 = sshll.u32 %s323_s29, 2  ;;  %s1978_s21 = scalar_lea.hbm %s2204_s0, %s1270_s18 }
  0x75   : > { %s327_s23 = scalar_lea.vmem [#allocation2], %s1973_s24  ;;  %p1981_p11 = pnand %p1443_p6, %p45_p10 }
  0x76   : > { %s334_s19 = sshll.u32 %s327_s23, 4  ;;  %s1990_s20 = scalar_lea.hbm %s2205_s1, %s1270_s18  ;;  %s1985_s19 = int_to_ptr.vmem [resolvable:$true] %s334_s19 }
  0x77   : > { %s324_s30 = scalar_lea.sflag [#allocation3], %s323_s29  ;;  %s1604_s25 = scalar_lea.hbm %s1978_s21, 64 }
  0x78   : > { %p1605_p7 = scmp.ne.s32.totalorder %s1978_s21, %s1604_s25  ;;  %p1606_p9 = pneg %p1981_p11 }
  0x79   : > { %s1609_s3 = scalar_lea.hbm %s2204_s0, 128  ;;  %p1610_p1 = scmp.lt.u32.totalorder %s1978_s21, %s2204_s0 }
  0x7a   : > { %p1607_p12 = pnand %p1606_p9, %p1605_p7  ;;  %p1611_p2 = scmp.lt.u32.totalorder %s1609_s3, %s1604_s25 }
  0x7b   : > { %p1613_p8 = scmp.lt.u32.totalorder %s1604_s25, %s1978_s21 }
  0x7c   : > { %p1608_p0 = pneg %p1607_p12  ;;  %p1612_p4 = por %p1611_p2, %p1610_p1 }
  0x7e   : > { %p1614_p13 = por %p1613_p8, %p1612_p4 }
  0x80   : > { %p1615_p6 = pnand %p1614_p13, %p1608_p0 }
  0x82   : > { %1618 = shalt.err (!%p1615_p6)
}
  0x83   : > { %s1619_s29 = scalar_lea.vmem %s1985_s19, 64  ;;  %s1749_s18 = smov [#allocation2]  }
  0x84   : > { %p1620_p10 = scmp.ne.s32.totalorder %s1985_s19, %s1619_s29  ;;  %s1624_s22 = sshll.u32 %s1749_s18, 4  ;;  %s1625_s22 = int_to_ptr.vmem [resolvable:$false] %s1624_s22 }
  0x85   : > { %s1626_s4 = scalar_lea.vmem %s1625_s22, 128  ;;  %p1627_p12 = scmp.lt.s32.totalorder %s1985_s19, %s1625_s22 }
  0x86   : > { %p1622_p3 = pnand %p1620_p10, %p1606_p9  ;;  %p1628_p1 = scmp.lt.s32.totalorder %s1626_s4, %s1619_s29 }
  0x88   : > { %p1623_p7 = pneg %p1622_p3  ;;  %p1629_p2 = por %p1628_p1, %p1627_p12 }
  0x8a   : > { %p1630_p4 = pnand %p1629_p2, %p1623_p7 }
  0x8c   : > { %1633 = shalt.err (!%p1630_p4)
}
  0x8d   : > { %1432 = dma.hbm_to_vmem [thread:$0]  (!%p1981_p11), %s1978_s21, 64, %s1985_s19, %s324_s30  }
  0x8e   : > { %s341_s3 = sand.u32 1, %s1742_s12   ;;  %s345_s7 = scalar_lea.vmem [#allocation5], %s1973_s24 }
  0x8f   : > { %s352_s9 = sshll.u32 %s345_s7, 4  ;;  %s342_s25 = scalar_lea.sflag [#allocation6], %s341_s3  ;;  %s353_s9 = int_to_ptr.vmem [resolvable:$true] %s352_s9 }
  0x90   : > { %s1634_s26 = scalar_lea.hbm %s1990_s20, 64  ;;  %s1639_s18 = scalar_lea.hbm %s2205_s1, 128 }
  0x91   : > { %p1635_p0 = scmp.ne.s32.totalorder %s1990_s20, %s1634_s26  ;;  %p1640_p6 = scmp.lt.u32.totalorder %s1990_s20, %s2205_s1 }
  0x92   : > { %p1641_p10 = scmp.lt.u32.totalorder %s1639_s18, %s1634_s26  ;;  %p1643_p7 = scmp.lt.u32.totalorder %s1634_s26, %s1990_s20 }
  0x93   : > { %p1637_p8 = pnand %p1635_p0, %p1606_p9 }
  0x94   : > { %p1642_p3 = por %p1641_p10, %p1640_p6 }
  0x95   : > { %p1638_p13 = pneg %p1637_p8 }
  0x96   : > { %p1644_p12 = por %p1643_p7, %p1642_p3 }
  0x98   : > { %p1645_p1 = pnand %p1644_p12, %p1638_p13 }
  0x9a   : > { %1648 = shalt.err (!%p1645_p1)
}
  0x9b   : > { %s1649_s24 = scalar_lea.vmem %s353_s9, 64  ;;  %s1750_s21 = smov [#allocation5]  }
  0x9c   : > { %p1650_p2 = scmp.ne.s32.totalorder %s353_s9, %s1649_s24  ;;  %s1654_s19 = sshll.u32 %s1750_s21, 4  ;;  %s1655_s19 = int_to_ptr.vmem [resolvable:$false] %s1654_s19 }
  0x9d   : > { %s1656_s30 = scalar_lea.vmem %s1655_s19, 128  ;;  %p1657_p8 = scmp.lt.s32.totalorder %s353_s9, %s1655_s19 }
  0x9e   : > { %p1652_p4 = pnand %p1650_p2, %p1606_p9  ;;  %p1658_p5 = scmp.lt.s32.totalorder %s1656_s30, %s1649_s24 }
  0xa0   : > { %p1653_p0 = pneg %p1652_p4  ;;  %p1659_p6 = por %p1658_p5, %p1657_p8 }
  0xa2   : > { %p1660_p10 = pnand %p1659_p6, %p1653_p0 }
  0xa4   : > { %1663 = shalt.err (!%p1660_p10)
}
  0xa5   : > { %1435 = dma.hbm_to_vmem [thread:$0]  (!%p1981_p11), %s1990_s20, 64, %s353_s9, %s342_s25  }
  0xa6   : > { %p2238_p13 = scmp.ne.s32.totalorder %s2229_s17, 0 }
  0xa7   : > { %s2041_s3 = sand.u32 (!%p2238_p13), 1, %s1734_s10   ;;  %p2239_p9 = scmp.ne.s32.totalorder (!%p2238_p13), %s2226_s15, 0 }
  0xa8   : > { %367 = sbr.rel (%p2238_p13) target bundleno = 1491 (0x5d3), region = 56  ;;  %s1274_s7 = sshll.u32 (!%p2238_p13), %s2041_s3, 2 }
  0xa9   : > { %s370_s26 = scalar_lea.sflag (!%p2238_p13), [#allocation3], %s2041_s3  ;;  %s373_s23 = scalar_lea.vmem (!%p2238_p13), [#allocation2], %s1274_s7 }
  0xaf   : > { %1709 = dma.done.wait (%p2239_p9), %s370_s26, 64  }
  0xb0   : > { %1711 = vsyncadd (%p2239_p9), %s370_s26, 4294967232  ;;  %s378_s16 = sand.u32 1, %s1836_s13   ;;  %s382_s17 = scalar_lea.vmem [#allocation5], %s1274_s7 }
  0xb1   : > { %s379_s20 = scalar_lea.sflag [#allocation6], %s378_s16 }
  0xb2   : > { %1713 = dma.done.wait (%p2239_p9), %s379_s20, 64  }
  0xb3   : > { %1715 = vsyncadd (%p2239_p9), %s379_s20, 4294967232  ;;  %p2240_p5 = scmp.eq.s32.totalorder %s1836_s13, 0 }
  0xb5   : > { %1717 = dma.done.wait (%p2240_p5), [#allocation6], 256   ;;  %p2241_p11 = pmov %p2240_p5 }
  0xb6   : > { %p2242_p3 = pmov %p2240_p5 }
  0xb7   : > { %1719 = vsyncadd (%p2241_p11), [#allocation6], 4294967040 }
  0xb8   : > { %1721 = dma.done.wait (%p2242_p3), [#allocation9], 272   ;;  %p2243_p7 = pmov %p2242_p3 }
  0xb9   : > { %v1751_v0 = vmov 0.0   ;;  %vm1752_vm0 = vmmov 0   ;;  %v1498_v1 = vld [vmem:[%s2209_s5] sm:$0xff]   ;;  %v1500_v3 = vld [vmem:[%s2209_s5 + $0x8] sm:$0xff]   ;;  %v442_v5 = vld [vmem:[%s382_s17] sm:$0xf]  ;;  %v576_v34 = vlaneseq }
  0xba   : > { %1723 = vsyncadd (%p2243_p7), [#allocation9], 4294967024  ;;  %1337 = vmatprep.subr.bf16.mxu1 %v1751_v0  ;;  %1329 = vmatprep.subr.bf16.mxu0 %v1751_v0  ;;  %v1499_v2 = vld [vmem:[#allocation7] sm:$0xff]   ;;  %v1501_v4 = vld [vmem:[#allocation7 + $0x8] sm:$0xff]   ;;  %vm466_vm1 = vcmask 261120   ;;  %vm594_vm2 = vcmask 64512  }
  0xbb   : > { %1341 = vmatprep.mubr.msk.bf16.mxu1 %vm1752_vm0, %v1751_v0  ;;  %1333 = vmatprep.mubr.msk.bf16.mxu0 %vm1752_vm0, %v1751_v0  ;;  %v441_v6 = vld [vmem:[%s373_s23] sm:$0xf]  ;;  %v1284_v7 = vld [vmem:[%s2210_s6] ss:$0 sm:$0xff]  ;;  %s1753_s4 = smov 112   ;;  %s1754_s24 = smov 120  }
  0xbc   : > { %1338 = vmatpush3.bf16.msra.mxu1 %v1498_v1  ;;  %1330 = vmatpush3.bf16.msra.mxu0 %v1499_v2  ;;  %v1280_v8 = vld [vmem:[#allocation8] ss:$0 sm:$0xff]  ;;  %s1755_s21 = smov 104   ;;  %s1756_s19 = smov 96   ;;  %vm658_vm3 = vcmask 1043456   ;;  %v577_v36 = vshrl.u32 %v576_v34, 7 }
  0xbd   : > { %1339 = vmatprep.subr.bf16.mxu1 %v1751_v0  ;;  %1331 = vmatprep.subr.bf16.mxu0 %v1751_v0  ;;  %p437_p12 = scmp.lt.s32.totalorder %s1836_s13, 1  ;;  %v1757_v38 = vmov 0   ;;  %v579_v40 = vand.u32 127, %v576_v34  ;;  %s1758_s16 = smov 80   ;;  %vm1047_vm8 = vcmask 130048   ;;  %vm1049_vm9 = vcmask 195584  }
  0xbe   : > { %v586_v37 = vsub.s32 0, %v577_v36  ;;  %s1759_s20 = smov 72   ;;  %s1760_s17 = smov 88  }
  0xbf   : > { %s438_s30 = scalar_select %p437_p12, %s1836_s13, 1  ;;  %vm580_vm5 = vcmp.gt.s32.totalorder %v579_v40, %v577_v36  ;;  %v1502_v40 = vld [vmem:[#allocation10] sm:$0xff]  }
  0xc0   : > { %1340 = vmatpush3.bf16.msra.mxu1 %v1500_v3  ;;  %1332 = vmatpush3.bf16.msra.mxu0 %v1501_v4  ;;  %s1761_s15 = smov 8   ;;  %s1762_s9 = smov 16  }
  0xc1   : > { %1351 = vmatprep.subr.bf16.mxu1 %v1751_v0  ;;  %1345 = vmatprep.subr.bf16.mxu0 %v1751_v0  ;;  %s439_s23 = scalar_lea.vmem %s2206_s2, %s438_s30  ;;  %s1763_s25 = smov 24  }
  0xc2   : > { %v581_v35 = vld [vmem:[%s439_s23] sm:$0x1]  ;;  %s1279_s29 = sshll.u32 %s2041_s3, 3  ;;  %s2244_s7 = sld [smem:[#allocation22_spill]] }
  0xc3   : > { %1342 = vmatmul.mubr.msk.bf16.vlgmr.msra.gmra.mrb[0].mxu1 %vm466_vm1, %v442_v5  ;;  %1334 = vmatmul.mubr.msk.bf16.vlgmr.msra.gmra.mrb[0].mxu0 %vm466_vm1, %v441_v6  ;;  %vm582_vm4 = vcmp.gt.s32.totalorder %v581_v35, 0  ;;  %p2245_p2 = scmp.ne.s32.totalorder %s2236_s28, 0 }
  0xc4   : > { %1353 = vmatprep.mubr.msk.bf16.mxu1 %vm1752_vm0, %v1751_v0  ;;  %1347 = vmatprep.mubr.msk.bf16.mxu0 %vm1752_vm0, %v1751_v0  ;;  %v583_v39 = vsel %vm582_vm4, 1, %v1757_v38 }
  0xc5   : > { %v587_v41 = vrot.slane %v583_v39, %v586_v37 }
  0xc7   : > { %vm588_vm6 = vcmp.eq.s32.totalorder %v587_v41, 1 }
  0xc8   : > { %vm589_vm7 = vmor %vm580_vm5, %vm588_vm6 }
  0xc9   : > { %v590_v42 = vsel %vm589_vm7, -1e+30, %v1751_v0 }
 0x196   : > { %v570_v9 = vpop.f32.mrb[0].mxu1  ;;  %v504_v12 = vpop.f32.mrb[0].mxu0 }
 0x197   : > { %v571_v10 = vadd.f32 %v1284_v7, %v570_v9  ;;  %v1343_v11 = vpop.f32.mrb[1].mxu1  ;;  %v505_v13 = vadd.f32 %v1280_v8, %v504_v12  ;;  %v1335_v15 = vpop.f32.mrb[1].mxu0 }
 0x198   : > { %v573_v14 = vpop.f32.mrb[2].mxu1  ;;  %v507_v18 = vpop.f32.mrb[2].mxu0 }
 0x199   : > { %v2087_v16 = vpack.c.bf16 %v571_v10, %v571_v10  ;;  %v1344_v17 = vpop.f32.mrb[3].mxu1  ;;  %v591_v19 = vmul.f32 0.35355338, %v505_v13  ;;  %v1336_v20 = vpop.f32.mrb[3].mxu0 }
 0x19b   : > { %816 = vrot.lane.b32.xlu1 %v2087_v16, %s1753_s4  ;;  %706 = vrot.lane.b32.xlu0 %v2087_v16, %s1754_s24  ;;  %v599_v21 = vsel %vm594_vm2, %v2087_v16, 0  ;;  %v592_v22 = vpack.c.bf16 %v591_v19, %v591_v19 }
 0x19c   : > { %1346 = vmatpush3.bf16.xpose.msra.mxu0 %v599_v21 }
 0x19d   : > { %1357 = vmatprep.subr.bf16.mxu0 %v1751_v0 }
 0x19f   : > { %814 = vrot.lane.b32.xlu1 %v592_v22, %s1753_s4  ;;  %704 = vrot.lane.b32.xlu0 %v592_v22, %s1754_s24  ;;  %s1301_s4 = sshll.u32 %s1836_s13, 7  ;;  %s436_s24 = scalar_lea.vmem [#allocation11], %s1279_s29 }
 0x1a0   : > { %s2159_s26 = scalar_lea.hbm %s2244_s7, %s1301_s4  ;;  %s1120_s13 = scalar_lea.sflag [#allocation4], %s2041_s3 }
 0x1a3   : > { %924 = vrot.lane.b32.xlu1 %v592_v22, %s1755_s21  ;;  %926 = vrot.lane.b32.xlu0 %v2087_v16, %s1755_s21  ;;  %s1133_s21 = sshll.u32 %s436_s24, 4  ;;  %s2161_s21 = int_to_ptr.vmem [resolvable:$true] %s1133_s21 }
 0x1a4   : > { %1348 = vmatmul.mubr.msk.bf16.vlgmr.msra.gmra.mrb[4].mxu0 %vm594_vm2, %v592_v22  ;;  %s1664_s23 = scalar_lea.vmem %s2161_s21, 128 }
 0x1a5   : > { %1359 = vmatprep.mubr.msk.bf16.mxu0 %vm1752_vm0, %v1751_v0  ;;  %p1665_p1 = scmp.ne.s32.totalorder %s2161_s21, %s1664_s23 }
 0x1a7   : > { %653 = vrot.lane.b32.xlu1 %v2087_v16, %s1756_s19  ;;  %p1666_p4 = pnand %p1665_p1, %p2245_p2 }
 0x1a9   : > { %p1667_p0 = pneg %p1666_p4 }
 0x20d   : > { %v817_v23 = vpop.permute.xlu1 %816  ;;  %v707_v24 = vpop.permute.xlu0 %706 }
 0x20e   : > { %v712_v25 = vsel %vm594_vm2, %v707_v24, 0  ;;  %v822_v29 = vsel %vm594_vm2, %v817_v23, 0 }
 0x20f   : > { %1358 = vmatpush3.bf16.xpose.msra.mxu0 %v712_v25 }
 0x210   : > { %1369 = vmatprep.subr.bf16.mxu0 %v1751_v0 }
 0x211   : > { %v815_v26 = vpop.permute.xlu1 %814  ;;  %v705_v27 = vpop.permute.xlu0 %704 }
 0x215   : > { %v925_v28 = vpop.permute.xlu1 %924  ;;  %v927_v32 = vpop.permute.xlu0 %926 }
 0x216   : > { %1360 = vmatmul.mubr.msk.bf16.vlgmr.msra.gmra.mrb[8].mxu0 %vm594_vm2, %v705_v27  ;;  %v932_v33 = vsel %vm594_vm2, %v927_v32, 0 }
 0x217   : > { %1370 = vmatpush3.bf16.xpose.msra.mxu0 %v822_v29  ;;  %1371 = vmatprep.mubr.msk.bf16.mxu0 %vm1752_vm0, %v1751_v0 }
 0x218   : > { %1381 = vmatprep.subr.bf16.mxu0 %v1751_v0 }
 0x219   : > { %v654_v30 = vpop.permute.xlu1 %653 }
 0x21a   : > { %v660_v31 = vsel %vm658_vm3, %v654_v30, 0 }
 0x21b   : > { %1352 = vmatpush3.bf16.msra.mxu1 %v660_v31 }
 0x21c   : > { %1363 = vmatprep.subr.bf16.mxu1 %v1751_v0 }
 0x21e   : > { %1372 = vmatmul.mubr.msk.bf16.vlgmr.msra.gmra.mrb[12].mxu0 %vm594_vm2, %v815_v26 }
 0x21f   : > { %1382 = vmatpush3.bf16.xpose.msra.mxu0 %v932_v33  ;;  %1383 = vmatprep.mubr.msk.bf16.mxu0 %vm1752_vm0, %v1751_v0 }
 0x220   : > { %1393 = vmatprep.subr.bf16.mxu0 %v1751_v0 }
 0x226   : > { %1384 = vmatmul.mubr.msk.bf16.vlgmr.msra.gmra.mrb[16].mxu0 %vm594_vm2, %v925_v28 }
 0x227   : > { %1397 = vmatprep.mubr.msk.bf16.mxu0 %vm1752_vm0, %v1751_v0  ;;  %1394 = vmatpush3.bf16.msra.mxu0 %v1502_v40 }
 0x228   : > { %1395 = vmatprep.subr.bf16.mxu0 %v1751_v0 }
 0x277   : > { %v635_v43 = vpop.f32.mrb[4].mxu0 }
 0x278   : > { %v636_v44 = vadd.f32 %v635_v43, %v590_v42  ;;  %v1349_v45 = vpop.f32.mrb[5].mxu0 }
 0x279   : > { %v638_v46 = vpop.f32.mrb[6].mxu0 }
 0x27a   : > { %v1350_v47 = vpop.f32.mrb[7].mxu0  ;;  %v641_v48 = vsel %vm594_vm2, %v636_v44, -inf }
 0x27b   : > { %642 = vmax.xlane.f32.xlu0 %v641_v48  ;;  %v1503_v48 = vld [vmem:[#allocation10 + $0x8] sm:$0xff]  }
 0x27c   : > { %1396 = vmatpush3.bf16.msra.mxu0 %v1503_v48 }
 0x2e9   : > { %v748_v49 = vpop.f32.mrb[8].mxu0 }
 0x2ea   : > { %v749_v50 = vadd.f32 %v748_v49, %v590_v42  ;;  %v1361_v51 = vpop.f32.mrb[9].mxu0 }
 0x2eb   : > { %v751_v52 = vpop.f32.mrb[10].mxu0 }
 0x2ec   : > { %v1362_v53 = vpop.f32.mrb[11].mxu0  ;;  %v754_v54 = vsel %vm594_vm2, %v749_v50, -inf }
 0x2ed   : > { %755 = vmax.xlane.f32.xlu1 %v754_v54 }
 0x2f1   : > { %v858_v55 = vpop.f32.mrb[12].mxu0 }
 0x2f2   : > { %v859_v56 = vadd.f32 %v858_v55, %v590_v42  ;;  %v1373_v57 = vpop.f32.mrb[13].mxu0 }
 0x2f3   : > { %v861_v58 = vpop.f32.mrb[14].mxu0 }
 0x2f4   : > { %v1374_v59 = vpop.f32.mrb[15].mxu0  ;;  %v864_v60 = vsel %vm594_vm2, %v859_v56, -inf }
 0x2f5   : > { %865 = vmax.xlane.f32.xlu0 %v864_v60 }
 0x2f9   : > { %v968_v61 = vpop.f32.mrb[16].mxu0 }
 0x2fa   : > { %v969_v62 = vadd.f32 %v968_v61, %v590_v42  ;;  %v1385_v63 = vpop.f32.mrb[17].mxu0 }
 0x2fb   : > { %v971_v1 = vpop.f32.mrb[18].mxu0 }
 0x2fc   : > { %v1386_v2 = vpop.f32.mrb[19].mxu0  ;;  %v974_v3 = vsel %vm594_vm2, %v969_v62, -inf }
 0x2fd   : > { %975 = vmax.xlane.f32.xlu0 %v974_v3 }
 0x2fe   : > { %875 = vrot.lane.b32.xlu1 %v2087_v16, %s1758_s16  ;;  %s1764_s16 = smov [#allocation11]  }
 0x302   : > { %985 = vrot.lane.b32.xlu1 %v2087_v16, %s1759_s20  ;;  %s1668_s20 = sshll.u32 %s1764_s16, 4  ;;  %s1669_s20 = int_to_ptr.vmem [resolvable:$false] %s1668_s20 }
 0x303   : > { %p1671_p8 = scmp.lt.s32.totalorder %s2161_s21, %s1669_s20 }
 0x308   : > { %v643_v4 = vpop.xlane.xlu0 %642 }
 0x309   : > { %v644_v5 = vsub.f32 %v636_v44, %v643_v4 }
 0x30b   : > { %v645_v6 = vmul.f32 1.442695, %v644_v5 }
 0x30d   : > { %1504 = vpow2.f32 %v645_v6 }
 0x313   : > { %765 = vrot.lane.b32.xlu0 %v2087_v16, %s1760_s17  ;;  %s1670_s17 = scalar_lea.vmem %s1669_s20, 256 }
 0x314   : > { %p1672_p6 = scmp.lt.s32.totalorder %s1670_s17, %s1664_s23 }
 0x316   : > { %p1673_p10 = por %p1672_p6, %p1671_p8 }
 0x317   : > { %v1505_v7 = vpop.eup %1504 }
 0x318   : > { %v651_v8 = vpack.c.bf16 %v1505_v7, %v1505_v7  ;;  %v647_v32 = vsel %vm594_vm2, %v1505_v7, 0.0  ;;  %v1296_v7 = vld [vmem:[%s2212_s8] ss:$0 sm:$0xff]  ;;  %p1674_p13 = pnand %p1673_p10, %p1667_p0 }
 0x31a   : > { %1354 = vmatmul.mubr.msk.bf16.vlgmr.msra.gmra.mrb[4].mxu1 %vm594_vm2, %v651_v8 }
 0x31b   : > { %1365 = vmatprep.mubr.msk.bf16.mxu1 %vm1752_vm0, %v1751_v0 }
 0x37a   : > { %v756_v9 = vpop.xlane.xlu1 %755 }
 0x37b   : > { %v757_v10 = vsub.f32 %v749_v50, %v756_v9 }
 0x37d   : > { %v758_v11 = vmul.f32 1.442695, %v757_v10 }
 0x37e   : > { %v876_v22 = vpop.permute.xlu1 %875 }
 0x37f   : > { %1506 = vpow2.f32 %v758_v11  ;;  %v881_v26 = vsel %vm658_vm3, %v876_v22, 0 }
 0x382   : > { %v866_v12 = vpop.xlane.xlu0 %865  ;;  %v986_v27 = vpop.permute.xlu1 %985 }
 0x383   : > { %v867_v13 = vsub.f32 %v859_v56, %v866_v12  ;;  %v991_v31 = vsel %vm658_vm3, %v986_v27, 0 }
 0x385   : > { %v868_v14 = vmul.f32 1.442695, %v867_v13 }
 0x387   : > { %1508 = vpow2.f32 %v868_v14 }
 0x389   : > { %v1507_v15 = vpop.eup %1506 }
 0x38a   : > { %v976_v17 = vpop.xlane.xlu0 %975  ;;  %v760_v18 = vsel %vm594_vm2, %v1507_v15, 0.0  ;;  %v764_v24 = vpack.c.bf16 %v1507_v15, %v1507_v15 }
 0x38b   : > { %v977_v16 = vsub.f32 %v969_v62, %v976_v17  ;;  %761 = vadd.xlane.f32.xlu0 %v760_v18 }
 0x38d   : > { %v978_v19 = vmul.f32 1.442695, %v977_v16 }
 0x38e   : > { %v766_v20 = vpop.permute.xlu0 %765 }
 0x38f   : > { %1510 = vpow2.f32 %v978_v19  ;;  %v771_v21 = vsel %vm658_vm3, %v766_v20, 0 }
 0x390   : > { %1364 = vmatpush3.bf16.msra.mxu1 %v771_v21 }
 0x391   : > { %v1509_v23 = vpop.eup %1508  ;;  %1375 = vmatprep.subr.bf16.mxu1 %v1751_v0 }
 0x392   : > { %v870_v25 = vsel %vm594_vm2, %v1509_v23, 0.0  ;;  %v874_v29 = vpack.c.bf16 %v1509_v23, %v1509_v23 }
 0x393   : > { %871 = vadd.xlane.f32.xlu1 %v870_v25  ;;  %1366 = vmatmul.mubr.msk.bf16.vlgmr.msra.gmra.mrb[8].mxu1 %vm594_vm2, %v764_v24 }
 0x394   : > { %1376 = vmatpush3.bf16.msra.mxu1 %v881_v26  ;;  %1377 = vmatprep.mubr.msk.bf16.mxu1 %vm1752_vm0, %v1751_v0 }
 0x395   : > { %1387 = vmatprep.subr.bf16.mxu1 %v1751_v0 }
 0x399   : > { %v1511_v28 = vpop.eup %1510 }
 0x39a   : > { %v980_v30 = vsel %vm594_vm2, %v1511_v28, 0.0  ;;  %v984_v33 = vpack.c.bf16 %v1511_v28, %v1511_v28 }
 0x39b   : > { %981 = vadd.xlane.f32.xlu0 %v980_v30  ;;  %1378 = vmatmul.mubr.msk.bf16.vlgmr.msra.gmra.mrb[12].mxu1 %vm594_vm2, %v874_v29 }
 0x39c   : > { %1388 = vmatpush3.bf16.msra.mxu1 %v991_v31  ;;  %1389 = vmatprep.mubr.msk.bf16.mxu1 %vm1752_vm0, %v1751_v0 }
 0x39f   : > { %648 = vadd.xlane.f32.xlu0 %v647_v32 }
 0x3a3   : > { %1390 = vmatmul.mubr.msk.bf16.vlgmr.msra.gmra.mrb[16].mxu1 %vm594_vm2, %v984_v33 }
 0x3ed   : > { %v696_v34 = vpop.f32.mrb[4].mxu1 }
 0x3ee   : > { %v1355_v35 = vpop.f32.mrb[5].mxu1 }
 0x3ef   : > { %v699_v36 = vpop.f32.mrb[6].mxu1 }
 0x3f0   : > { %v1356_v37 = vpop.f32.mrb[7].mxu1 }
 0x418   : > { %v762_v38 = vpop.xlane.xlu0 %761 }
 0x419   : > { %1512 = vrcp.f32 %v762_v38 }
 0x420   : > { %v872_v39 = vpop.xlane.xlu1 %871 }
 0x421   : > { %1514 = vrcp.f32 %v872_v39 }
 0x423   : > { %v1513_v41 = vpop.eup %1512 }
 0x428   : > { %v982_v46 = vpop.xlane.xlu0 %981 }
 0x429   : > { %1516 = vrcp.f32 %v982_v46 }
 0x42b   : > { %v1515_v49 = vpop.eup %1514 }
 0x42c   : > { %v649_v60 = vpop.xlane.xlu0 %648 }
 0x42d   : > { %1518 = vrcp.f32 %v649_v60 }
 0x433   : > { %v1517_v55 = vpop.eup %1516 }
 0x437   : > { %v1519_v61 = vpop.eup %1518 }
 0x438   : > { %v702_v63 = vmul.f32 %v1519_v61, %v696_v34 }
 0x466   : > { %v807_v42 = vpop.f32.mrb[8].mxu1 }
 0x467   : > { %v813_v43 = vmul.f32 %v1513_v41, %v807_v42  ;;  %v1367_v44 = vpop.f32.mrb[9].mxu1 }
 0x468   : > { %v810_v45 = vpop.f32.mrb[10].mxu1 }
 0x469   : > { %v1368_v47 = vpop.f32.mrb[11].mxu1  ;;  %1035 = vrot.lane.b32.xlu1 %v813_v43, %s1761_s15 }
 0x46e   : > { %v917_v50 = vpop.f32.mrb[12].mxu1 }
 0x46f   : > { %v923_v51 = vmul.f32 %v1515_v49, %v917_v50  ;;  %v1379_v52 = vpop.f32.mrb[13].mxu1 }
 0x470   : > { %v920_v53 = vpop.f32.mrb[14].mxu1 }
 0x471   : > { %1039 = vrot.lane.b32.xlu0 %v923_v51, %s1762_s9  ;;  %v1380_v54 = vpop.f32.mrb[15].mxu1 }
 0x476   : > { %v1027_v56 = vpop.f32.mrb[16].mxu1 }
 0x477   : > { %v1033_v57 = vmul.f32 %v1517_v55, %v1027_v56  ;;  %v1391_v0 = vpop.f32.mrb[17].mxu1 }
 0x478   : > { %v1030_v58 = vpop.f32.mrb[18].mxu1 }
 0x479   : > { %v1392_v59 = vpop.f32.mrb[19].mxu1  ;;  %1043 = vrot.lane.b32.xlu1 %v1033_v57, %s1763_s25 }
 0x4db   : > { %v1036_v62 = vpop.permute.xlu1 %1035 }
 0x4dc   : > { %v1046_v2 = vsel %vm594_vm2, %v702_v63, %v1036_v62 }
 0x4e3   : > { %v1040_v1 = vpop.permute.xlu0 %1039 }
 0x4e4   : > { %v1048_v3 = vsel %vm1047_vm8, %v1046_v2, %v1040_v1 }
 0x4eb   : > { %v1044_v4 = vpop.permute.xlu1 %1043 }
 0x4ec   : > { %v1050_v5 = vsel %vm1049_vm9, %v1048_v3, %v1044_v4 }
 0x4ed   : > { %v1051_v6 = vpack.c.bf16 %v1050_v5, %v1050_v5 }
 0x4ef   : > { %1398 = vmatmul.mubr.msk.bf16.vlgmr.msra.gmra.mrb[20].mxu0 %vm466_vm1, %v1051_v6 }
 0x5c2   : > { %v1112_v8 = vpop.f32.mrb[20].mxu0 }
 0x5c3   : > { %v1113_v9 = vadd.f32 %v1296_v7, %v1112_v8  ;;  %v1399_v10 = vpop.f32.mrb[21].mxu0 }
 0x5c4   : > { %v1115_v11 = vpop.f32.mrb[22].mxu0 }
 0x5c5   : > { %v1400_v12 = vpop.f32.mrb[23].mxu0  ;;  %1118 = vst.msk [vmem:[%s436_s24] sm:$0xff] %vm466_vm1, %v1113_v9 }
 0x5c6   : > { %1677 = shalt.err (!%p1674_p13)
}
 0x5c7   : > { %s1678_s3 = scalar_lea.hbm %s2159_s26, 128  ;;  %s1682_s25 = scalar_lea.hbm %s2244_s7, 256 }
 0x5c8   : > { %p1679_p9 = scmp.ne.s32.totalorder %s2159_s26, %s1678_s3  ;;  %p1683_p3 = scmp.lt.u32.totalorder %s2159_s26, %s2244_s7 }
 0x5c9   : > { %p1684_p7 = scmp.lt.u32.totalorder %s1682_s25, %s1678_s3  ;;  %p1686_p1 = scmp.lt.u32.totalorder %s1678_s3, %s2159_s26 }
 0x5ca   : > { %p1680_p5 = pnand %p1679_p9, %p2245_p2 }
 0x5cb   : > { %p1685_p12 = por %p1684_p7, %p1683_p3 }
 0x5cc   : > { %p1681_p11 = pneg %p1680_p5 }
 0x5cd   : > { %p1687_p4 = por %p1686_p1, %p1685_p12 }
 0x5cf   : > { %p1688_p0 = pnand %p1687_p4, %p1681_p11 }
 0x5d1   : > { %1691 = shalt.err (!%p1688_p0)
}
 0x5d2   : > { %1417 = dma.vmem_to_hbm [thread:$0]  (%p2245_p2), %s2161_s21, 128, %s2159_s26, %s1120_s13  }
 0x5d3 PF: > { %s2246_s22 = sld [smem:[#allocation17_spill]]  ;;  %s2247_s4 = sld [smem:[#allocation18_spill]] }
 0x5d4   : > { %p2249_p6 = scmp.ge.s32.totalorder %s1742_s12, 2 }
 0x5d9   : > { %s1145_s24 = sand.u32 1, %s2246_s22   ;;  %p2248_p8 = scmp.ne.s32.totalorder %s2247_s4, 0 }
 0x5da   : > { %s1146_s19 = scalar_lea.sflag [#allocation4], %s1145_s24 }
 0x5db   : > { %p1437_p10 = pnand %p2249_p6, %p2248_p8 }
 0x5dd   : > { %1725 = dma.done.wait (!%p1437_p10), %s1146_s19, 128  }
 0x5de   : > { %1727 = vsyncadd (!%p1437_p10), %s1146_s19, 4294967168  ;;  %p26_p13 = scmp.ge.s32.totalorder %s1953_s14, 4   ;;  %s2250_s30 = smov %s1734_s10 }
 0x5df   : > { %s2251_s10 = smov %s1738_s11  ;;  %s2252_s11 = smov %s1963_s27 }
 0x5e0   : > { %s2253_s12 = smov %s1953_s14  ;;  %28 = sbr.rel (!%p26_p13) target bundleno = 13 (0xd), region = 129 }
 0x5e7   :  { %1151 = vsyncpa [#allocation3], 1 }
 0x5e8   :  { %1153 = vsyncpa [#allocation3 + $0x1], 1 }
 0x5e9   :  { %1154 = vsyncpa [#allocation6], 1 }
 0x5ea   :  { %1156 = vsyncpa [#allocation6 + $0x1], 1 }
 0x5eb   :  { %1157 = vsyncpa [#allocation9], 1 }
 0x5ec   :  { %1158 = vsyncpa [#allocation4], 1 }
 0x5ed   :  { %1160 = vsyncpa [#allocation4 + $0x1], 1 }

</bundles_post_ra>
